<compile_context>
chip_gen: v5e
topology: v5e:2x2
jax: 0.10.0
libtpu: 0.0.40
codegen_flags: <defaults>
</compile_context>

<pallas_src>
import math
import jax
import jax.numpy as jnp
from jax.experimental import pallas as pl
from jax.experimental.pallas import tpu as pltpu

_LANE = 128      # vreg lane width  (last dim granule)
_SUBLANE = 8     # vreg sublane width (second-to-last dim granule)


def _round_up(x, m):
    return ((x + m - 1) // m) * m


def _policy_kernel(sb_ref, x_ref, w1_ref, b1_ref, w2_ref, b2_ref, w3_ref, b3_ref,
                   out_ref):
    """One batch tile: 3 MXU matmuls + VPU relu/tanh/affine, all in VMEM.

    sb_ref : SMEM f32[2]  -> [action_scale, action_bias]
    x_ref  : VMEM (TILE_B, D) state tile
    wN/bN  : VMEM resident (lane-padded) weights / biases
    out_ref: VMEM (TILE_B, A_pad) lane-dense output tile
    """
    x = x_ref[...]

    # linear1 + ReLU
    h1 = jnp.dot(x, w1_ref[...], preferred_element_type=jnp.float32) + b1_ref[...]
    h1 = jnp.maximum(h1, 0.0)

    # linear2 + ReLU
    h2 = jnp.dot(h1, w2_ref[...], preferred_element_type=jnp.float32) + b2_ref[...]
    h2 = jnp.maximum(h2, 0.0)

    # mean head + tanh, then affine action rescale (scalars live in SMEM)
    m = jnp.dot(h2, w3_ref[...], preferred_element_type=jnp.float32) + b3_ref[...]
    m = jnp.tanh(m)
    scale = sb_ref[0]
    bias = sb_ref[1]
    out_ref[...] = (m * scale + bias).astype(out_ref.dtype)


def deterministic_policy_forward(state, params, action_scale=1.0, action_bias=0.0,
                                 max_tile_b=512):
    """Fused 3-layer MLP policy forward pass.

    state  : (B, num_inputs) float32
    params : dict with w1 (D,H), b1 (1,H), w2 (H,H), b2 (1,H), w3 (H,A), b3 (1,A)
             (weights stored transposed as (in_features, out_features)).
    """
    state = state.astype(jnp.float32)
    B, D = state.shape
    H = params["w1"].shape[1]
    A = params["w3"].shape[1]

    Hp = _round_up(H, _LANE)          # lane-dense hidden width
    Ap = _round_up(A, _LANE)          # lane-dense action width (full vst rows)

    # Batch tiling: TILE_B rows per grid step (sublane aligned), batch padded up.
    tile_b = min(max_tile_b, _round_up(B, _SUBLANE))
    Bp = _round_up(B, tile_b)

    # Zero-pad to lane/sublane granules; zeros are inert through matmul/ReLU and
    # padded output columns only carry tanh(0)*scale+bias, which is sliced away.
    def pad2(a, rows, cols):
        a = a.astype(jnp.float32)
        return jnp.pad(a, ((0, rows - a.shape[0]), (0, cols - a.shape[1])))

    w1 = pad2(params["w1"], D, Hp)
    b1 = pad2(params["b1"], 1, Hp)
    w2 = pad2(params["w2"], Hp, Hp)
    b2 = pad2(params["b2"], 1, Hp)
    w3 = pad2(params["w3"], Hp, Ap)
    b3 = pad2(params["b3"], 1, Ap)
    x = pad2(state, Bp, D)

    # Runtime scalars in SMEM -> one compiled kernel for any action space.
    scale_bias = jnp.asarray([action_scale, action_bias], dtype=jnp.float32)

    grid = (Bp // tile_b,)

    out_padded = pl.pallas_call(
        _policy_kernel,
        out_shape=jax.ShapeDtypeStruct((Bp, Ap), jnp.float32),
        grid_spec=pltpu.PrefetchScalarGridSpec(
            num_scalar_prefetch=0,
            grid=grid,
            in_specs=[
                # [action_scale, action_bias] -> SMEM scalars
                pl.BlockSpec(memory_space=pltpu.MemorySpace.SMEM),
                # streamed state tiles (double-buffered by Pallas)
                pl.BlockSpec((tile_b, D), lambda i: (i, 0)),
                # VMEM-resident weights / biases (constant block index => no re-DMA)
                pl.BlockSpec((D, Hp), lambda i: (0, 0)),
                pl.BlockSpec((1, Hp), lambda i: (0, 0)),
                pl.BlockSpec((Hp, Hp), lambda i: (0, 0)),
                pl.BlockSpec((1, Hp), lambda i: (0, 0)),
                pl.BlockSpec((Hp, Ap), lambda i: (0, 0)),
                pl.BlockSpec((1, Ap), lambda i: (0, 0)),
            ],
            out_specs=pl.BlockSpec((tile_b, Ap), lambda i: (i, 0)),
        ),
        compiler_params=pltpu.CompilerParams(
            # Batch tiles are independent -> shard across v7x's 2 TensorCores.
            dimension_semantics=("parallel",),
        ),
    )(scale_bias, x, w1, b1, w2, b2, w3, b3)

    return out_padded[:B, :A]


def xavier_uniform(key, fan_in, fan_out, gain=1.0, dtype=jnp.float32):
    """Matches torch.nn.init.xavier_uniform_ (gain=1). Returns (fan_in, fan_out)."""
    limit = gain * math.sqrt(6.0 / (fan_in + fan_out))
    return jax.random.uniform(key, (fan_in, fan_out), dtype=dtype,
                              minval=-limit, maxval=limit)


def init_params(key, num_inputs, num_actions, hidden_dim):
    k1, k2, k3 = jax.random.split(key, 3)
    return {
        "w1": xavier_uniform(k1, num_inputs, hidden_dim),
        "b1": jnp.zeros((1, hidden_dim), jnp.float32),
        "w2": xavier_uniform(k2, hidden_dim, hidden_dim),
        "b2": jnp.zeros((1, hidden_dim), jnp.float32),
        "w3": xavier_uniform(k3, hidden_dim, num_actions),
        "b3": jnp.zeros((1, num_actions), jnp.float32),
    }


def reference_forward(state, params, action_scale=1.0, action_bias=0.0):
    """Plain-JAX reference (mirrors the PyTorch forward)."""
    x = jnp.maximum(state @ params["w1"] + params["b1"], 0.0)
    x = jnp.maximum(x @ params["w2"] + params["b2"], 0.0)
    return jnp.tanh(x @ params["w3"] + params["b3"]) * action_scale + action_bias


if __name__ == "__main__":
    # Small, module-consistent shapes: batch=2, num_inputs=8, hidden=32, actions=4
    B, NUM_INPUTS, NUM_ACTIONS, HIDDEN = 2, 8, 4, 32

    key = jax.random.PRNGKey(0)
    k_state, k_params = jax.random.split(key)

    state = jax.random.normal(k_state, (B, NUM_INPUTS), dtype=jnp.float32)
    params = init_params(k_params, NUM_INPUTS, NUM_ACTIONS, HIDDEN)

    # action_space is None in the module -> scale=1.0, bias=0.0
    out = deterministic_policy_forward(state, params, action_scale=1.0, action_bias=0.0)
    out = jax.block_until_ready(out)

    ref = reference_forward(state, params)
    assert out.shape == (B, NUM_ACTIONS)
    assert jnp.allclose(out, ref, atol=1e-5, rtol=1e-5), "mismatch vs JAX reference"

    # Sanity-check a larger, non-tile-multiple batch exercises the grid path too.
    B2 = 1000
    state2 = jax.random.normal(jax.random.PRNGKey(1), (B2, NUM_INPUTS), jnp.float32)
    out2 = jax.block_until_ready(
        deterministic_policy_forward(state2, params, action_scale=2.0, action_bias=0.5))
    ref2 = reference_forward(state2, params, 2.0, 0.5)
    assert out2.shape == (B2, NUM_ACTIONS)
    assert jnp.allclose(out2, ref2, atol=1e-5, rtol=1e-5), "mismatch on batched path"

    # TODO(synk): `sample()` uses torch's stateful in-place .normal_ noise buffer;
    # only the deterministic forward() hot path is implemented as a kernel.
    print("KERNEL_OK")
</pallas_src>

<mosaic_0001>
module attributes {stable_mosaic.version = 11 : i64} {
  func.func @_policy_kernel(%arg0: i32, %arg1: memref<2xf32, #tpu.memory_space<smem>>, %arg2: memref<8x8xf32, #tpu.memory_space<vmem>>, %arg3: memref<8x128xf32, #tpu.memory_space<vmem>>, %arg4: memref<1x128xf32, #tpu.memory_space<vmem>>, %arg5: memref<128x128xf32, #tpu.memory_space<vmem>>, %arg6: memref<1x128xf32, #tpu.memory_space<vmem>>, %arg7: memref<128x128xf32, #tpu.memory_space<vmem>>, %arg8: memref<1x128xf32, #tpu.memory_space<vmem>>, %arg9: memref<8x128xf32, #tpu.memory_space<vmem>>) attributes {dimension_semantics = [#tpu.dimension_semantics<parallel>], iteration_bounds = array<i64: 1>, scalar_prefetch = 0 : i64, scratch_operands = 0 : i64, tpu.core_type = #tpu.core_type<tc>, window_params = [{transform_indices = @transform_0, window_bounds = array<i64: 2>}, {transform_indices = @transform_1, window_bounds = array<i64: 8, 8>}, {pipeline_mode = #tpu.pipeline_mode<synchronous>, transform_indices = @transform_2, window_bounds = array<i64: 8, 128>}, {pipeline_mode = #tpu.pipeline_mode<synchronous>, transform_indices = @transform_3, window_bounds = array<i64: 1, 128>}, {pipeline_mode = #tpu.pipeline_mode<synchronous>, transform_indices = @transform_4, window_bounds = array<i64: 128, 128>}, {pipeline_mode = #tpu.pipeline_mode<synchronous>, transform_indices = @transform_5, window_bounds = array<i64: 1, 128>}, {pipeline_mode = #tpu.pipeline_mode<synchronous>, transform_indices = @transform_6, window_bounds = array<i64: 128, 128>}, {pipeline_mode = #tpu.pipeline_mode<synchronous>, transform_indices = @transform_7, window_bounds = array<i64: 1, 128>}, {transform_indices = @transform_8, window_bounds = array<i64: 8, 128>}]} {
    %c0 = arith.constant 0 : index
    %c0_0 = arith.constant 0 : index
    %0 = vector.load %arg2[%c0, %c0_0] : memref<8x8xf32, #tpu.memory_space<vmem>>, vector<8x8xf32>
    %c0_1 = arith.constant 0 : index
    %c0_2 = arith.constant 0 : index
    %1 = vector.load %arg3[%c0_1, %c0_2] : memref<8x128xf32, #tpu.memory_space<vmem>>, vector<8x128xf32>
    %cst = arith.constant dense<0.000000e+00> : vector<8x128xf32>
    %2 = tpu.matmul %0, %1, %cst {dimension_numbers = #tpu.dot_dimension_numbers<[1], [0], [0], [1], [0, 0, 1, 1], [], []>} : vector<8x8xf32>, vector<8x128xf32>, vector<8x128xf32> -> vector<8x128xf32>
    %c0_3 = arith.constant 0 : index
    %c0_4 = arith.constant 0 : index
    %3 = vector.load %arg4[%c0_3, %c0_4] : memref<1x128xf32, #tpu.memory_space<vmem>>, vector<1x128xf32>
    %4 = vector.broadcast %3 : vector<1x128xf32> to vector<8x128xf32>
    %5 = arith.addf %2, %4 : vector<8x128xf32>
    %cst_5 = arith.constant 0.000000e+00 : f32
    %6 = vector.broadcast %cst_5 : f32 to vector<8x128xf32>
    %7 = arith.maximumf %5, %6 : vector<8x128xf32>
    %c0_6 = arith.constant 0 : index
    %c0_7 = arith.constant 0 : index
    %8 = vector.load %arg5[%c0_6, %c0_7] : memref<128x128xf32, #tpu.memory_space<vmem>>, vector<128x128xf32>
    %cst_8 = arith.constant dense<0.000000e+00> : vector<8x128xf32>
    %9 = tpu.matmul %7, %8, %cst_8 {dimension_numbers = #tpu.dot_dimension_numbers<[1], [0], [0], [1], [0, 0, 1, 1], [], []>} : vector<8x128xf32>, vector<128x128xf32>, vector<8x128xf32> -> vector<8x128xf32>
    %c0_9 = arith.constant 0 : index
    %c0_10 = arith.constant 0 : index
    %10 = vector.load %arg6[%c0_9, %c0_10] : memref<1x128xf32, #tpu.memory_space<vmem>>, vector<1x128xf32>
    %11 = vector.broadcast %10 : vector<1x128xf32> to vector<8x128xf32>
    %12 = arith.addf %9, %11 : vector<8x128xf32>
    %cst_11 = arith.constant 0.000000e+00 : f32
    %13 = vector.broadcast %cst_11 : f32 to vector<8x128xf32>
    %14 = arith.maximumf %12, %13 : vector<8x128xf32>
    %c0_12 = arith.constant 0 : index
    %c0_13 = arith.constant 0 : index
    %15 = vector.load %arg7[%c0_12, %c0_13] : memref<128x128xf32, #tpu.memory_space<vmem>>, vector<128x128xf32>
    %cst_14 = arith.constant dense<0.000000e+00> : vector<8x128xf32>
    %16 = tpu.matmul %14, %15, %cst_14 {dimension_numbers = #tpu.dot_dimension_numbers<[1], [0], [0], [1], [0, 0, 1, 1], [], []>} : vector<8x128xf32>, vector<128x128xf32>, vector<8x128xf32> -> vector<8x128xf32>
    %c0_15 = arith.constant 0 : index
    %c0_16 = arith.constant 0 : index
    %17 = vector.load %arg8[%c0_15, %c0_16] : memref<1x128xf32, #tpu.memory_space<vmem>>, vector<1x128xf32>
    %18 = vector.broadcast %17 : vector<1x128xf32> to vector<8x128xf32>
    %19 = arith.addf %16, %18 : vector<8x128xf32>
    %20 = math.tanh %19 : vector<8x128xf32>
    %c0_17 = arith.constant 0 : index
    %21 = memref.load %arg1[%c0_17] : memref<2xf32, #tpu.memory_space<smem>>
    %c1 = arith.constant 1 : index
    %22 = memref.load %arg1[%c1] : memref<2xf32, #tpu.memory_space<smem>>
    %23 = vector.broadcast %21 : f32 to vector<8x128xf32>
    %24 = arith.mulf %20, %23 : vector<8x128xf32>
    %25 = vector.broadcast %22 : f32 to vector<8x128xf32>
    %26 = arith.addf %24, %25 : vector<8x128xf32>
    %c0_18 = arith.constant 0 : index
    %c0_19 = arith.constant 0 : index
    %27 = vector.load %arg9[%c0_18, %c0_19] : memref<8x128xf32, #tpu.memory_space<vmem>>, vector<8x128xf32>
    tpu.vector_store %arg9[%c0_18, %c0_19], %26 {strides = array<i32>} : memref<8x128xf32, #tpu.memory_space<vmem>>, vector<8x128xf32>,
    return
  }
  func.func @transform_0(%arg0: i32) -> i32 {
    %c0_i32 = arith.constant 0 : i32
    %c0_i32_0 = arith.constant 0 : i32
    return %c0_i32 : i32
  }
  func.func @transform_1(%arg0: i32) -> (i32, i32) {
    %c0_i32 = arith.constant 0 : i32
    %c0_i32_0 = arith.constant 0 : i32
    return %arg0, %c0_i32 : i32, i32
  }
  func.func @transform_2(%arg0: i32) -> (i32, i32) {
    %c0_i32 = arith.constant 0 : i32
    %c0_i32_0 = arith.constant 0 : i32
    %c0_i32_1 = arith.constant 0 : i32
    return %c0_i32, %c0_i32_0 : i32, i32
  }
  func.func @transform_3(%arg0: i32) -> (i32, i32) {
    %c0_i32 = arith.constant 0 : i32
    %c0_i32_0 = arith.constant 0 : i32
    %c0_i32_1 = arith.constant 0 : i32
    return %c0_i32, %c0_i32_0 : i32, i32
  }
  func.func @transform_4(%arg0: i32) -> (i32, i32) {
    %c0_i32 = arith.constant 0 : i32
    %c0_i32_0 = arith.constant 0 : i32
    %c0_i32_1 = arith.constant 0 : i32
    return %c0_i32, %c0_i32_0 : i32, i32
  }
  func.func @transform_5(%arg0: i32) -> (i32, i32) {
    %c0_i32 = arith.constant 0 : i32
    %c0_i32_0 = arith.constant 0 : i32
    %c0_i32_1 = arith.constant 0 : i32
    return %c0_i32, %c0_i32_0 : i32, i32
  }
  func.func @transform_6(%arg0: i32) -> (i32, i32) {
    %c0_i32 = arith.constant 0 : i32
    %c0_i32_0 = arith.constant 0 : i32
    %c0_i32_1 = arith.constant 0 : i32
    return %c0_i32, %c0_i32_0 : i32, i32
  }
  func.func @transform_7(%arg0: i32) -> (i32, i32) {
    %c0_i32 = arith.constant 0 : i32
    %c0_i32_0 = arith.constant 0 : i32
    %c0_i32_1 = arith.constant 0 : i32
    return %c0_i32, %c0_i32_0 : i32, i32
  }
  func.func @transform_8(%arg0: i32) -> (i32, i32) {
    %c0_i32 = arith.constant 0 : i32
    %c0_i32_0 = arith.constant 0 : i32
    return %arg0, %c0_i32 : i32, i32
  }
}

</mosaic_0001>

<bundles_post_ra>
// kernel: tpu_custom_call.1
= control target key start
LH: loop header
LB: loop body
LE: loop exit
PB: predicated region body
PF: predicated region fallthrough
CT: control target
= control target key end

     0   :  { %13 = vsyncpa [#allocation5], 0  ;;  %s479_s0 = inlined_call_operand.hbm [shape: f32[2], index: 0, kind: input, shape index: {}]   ;;  %s480_s1 = inlined_call_operand.hbm [shape: f32[8,8], index: 1, kind: input, shape index: {}]   ;;  %s481_s2 = inlined_call_operand.hbm [shape: f32[8,128], index: 2, kind: input, shape index: {}]   ;;  %s482_s3 = inlined_call_operand.vmem [shape: f32[1,128], index: 3, kind: input, shape index: {}]   ;;  %s483_s4 = inlined_call_operand.hbm [shape: f32[128,128], index: 4, kind: input, shape index: {}]   ;;  %s484_s5 = inlined_call_operand.vmem [shape: f32[1,128], index: 5, kind: input, shape index: {}]   ;;  %s485_s6 = inlined_call_operand.hbm [shape: f32[128,128], index: 6, kind: input, shape index: {}]   ;;  %s486_s7 = inlined_call_operand.vmem [shape: f32[1,128], index: 7, kind: input, shape index: {}]   ;;  %s487_s8 = inlined_call_operand.hbm [shape: f32[8,128], index: 8, kind: output, shape index: {}]  }
   0x1   :  { %14 = vsyncpa [#allocation3], 0 }
   0x2   :  { %15 = vsyncpa [#allocation8], 0 }
   0x3   :  { %16 = vsyncpa [#allocation11], 0  ;;  %s43_s29 = sshll.u32 %s481_s2, 4  ;;  %s44_s29 = int_to_ptr.hbm [resolvable:$true] %s43_s29 }
   0x4   :  { %17 = vsyncpa [#allocation4], 0  ;;  %s399_s30 = smov [#allocation7]   ;;  %s23_s12 = sshll.u32 %s479_s0, 4  ;;  %s24_s12 = int_to_ptr.hbm [resolvable:$true] %s23_s12 }
   0x5   :  { %s45_s9 = sshll.u32 %s399_s30, 4  ;;  %s400_s13 = smov [#allocation2]   ;;  %s46_s9 = int_to_ptr.vmem [resolvable:$true] %s45_s9 }
   0x6   :  { %48 = dma.hbm_to_vmem [thread:$0]  %s44_s29, 128, %s46_s9, [#allocation8]  }
   0x7   :  { %26 = dma.hbm_to_smem %s24_s12, 16, %s400_s13, [#allocation5]  }
   0x8   :  { %s32_s16 = sshll.u32 %s480_s1, 4  ;;  %s401_s17 = smov [#allocation6]   ;;  %s33_s16 = int_to_ptr.hbm [resolvable:$true] %s32_s16 }
   0x9   :  { %s34_s2 = sshll.u32 %s401_s17, 4  ;;  %s55_s20 = sshll.u32 %s483_s4, 4  ;;  %s35_s2 = int_to_ptr.vmem [resolvable:$true] %s34_s2  ;;  %s56_s20 = int_to_ptr.hbm [resolvable:$true] %s55_s20 }
   0xa   :  { %37 = dma.hbm_to_vmem [thread:$0]  %s33_s16, 128, %s35_s2, [#allocation3]  }
   0xb   :  { %s402_s21 = smov [#allocation9]   ;;  %s403_s22 = smov 128  }
   0xc   :  { %s57_s0 = sshll.u32 %s402_s21, 4  ;;  %s404_s23 = smov 8   ;;  %s58_s0 = int_to_ptr.vmem [resolvable:$true] %s57_s0 }
   0xd   :  { %63 = dma.hbm_to_vmem [thread:$0]  %s56_s20, 2048, %s58_s0, [#allocation8], %s403_s22, %s403_s22, %s404_s23  }
   0xe   :  { %s70_s1 = sshll.u32 %s485_s6, 4  ;;  %s405_s26 = smov [#allocation10]   ;;  %s71_s1 = int_to_ptr.hbm [resolvable:$true] %s70_s1 }
   0xf   :  { %s72_s27 = sshll.u32 %s405_s26, 4  ;;  %s73_s27 = int_to_ptr.vmem [resolvable:$true] %s72_s27 }
  0x10   :  { %78 = dma.hbm_to_vmem [thread:$0]  %s71_s1, 2048, %s73_s27, [#allocation11], %s403_s22, %s403_s22, %s404_s23  }
  0x11   :  { %389 = dma.done.wait [#allocation5], 16  }
  0x12   :  { %390 = vsyncadd [#allocation5], 4294967280 }
  0x13   :  { %391 = dma.done.wait [#allocation3], 128  }
  0x14   :  { %392 = vsyncadd [#allocation3], 4294967168 }
  0x15   :  { %393 = dma.done.wait [#allocation8], 2176  }
  0x16   :  { %394 = vsyncadd [#allocation8], 4294965120 }
  0x17   :  { %395 = dma.done.wait [#allocation11], 2048  }
  0x18   :  { %396 = vsyncadd [#allocation11], 4294965248 }
  0x19   :  { %101 = sfence }
  0x1a   :  { %v103_v0 = vld [vmem:[#allocation7] sm:$0xff]  ;;  %v102_v1 = vld [vmem:[#allocation6] sm:$0xff]  ;;  %vm108_vm0 = vcmask 64512   ;;  %v146_v4 = vld [vmem:[#allocation9 + $0x68] sm:$0xff]  ;;  %s215_s9 = sld [smem:[#allocation2]]  ;;  %s406_s11 = smov [#allocation12]  }
  0x1b   :  { %v148_v2 = vld [vmem:[#allocation9 + $0x78] sm:$0xff]  ;;  %127 = vmatpush.msra.mxu0 %v103_v0  ;;  %v147_v3 = vld [vmem:[#allocation9 + $0x70] sm:$0xff]  ;;  %v145_v5 = vld [vmem:[#allocation9 + $0x60] sm:$0xff]  ;;  %s243_s10 = sld [smem:[#allocation2 + $0x1]]  ;;  %s227_s12 = sshll.u32 %s406_s11, 4  ;;  %s228_s12 = int_to_ptr.vmem [resolvable:$true] %s227_s12 }
  0x1c   :  { %153 = vmatpush.msra.mxu1 %v148_v2  ;;  %242 = vmatmul.msk.f32.vlgmr.msra.gmra.mxu0 %vm108_vm0, %v102_v1  ;;  %v144_v6 = vld [vmem:[#allocation9 + $0x58] sm:$0xff]  ;;  %v143_v7 = vld [vmem:[#allocation9 + $0x50] sm:$0xff]  ;;  %v142_v8 = vld [vmem:[#allocation9 + $0x48] sm:$0xff]  ;;  %s229_s14 = sshll.u32 %s487_s8, 4  ;;  %s230_s14 = int_to_ptr.hbm [resolvable:$true] %s229_s14 }
  0x1d   :  { %v141_v9 = vld [vmem:[#allocation9 + $0x40] sm:$0xff]  ;;  %v140_v10 = vld [vmem:[#allocation9 + $0x38] sm:$0xff]  ;;  %v139_v11 = vld [vmem:[#allocation9 + $0x30] sm:$0xff] }
  0x1e   :  { %154 = vmatpush.msra.mxu1 %v147_v3  ;;  %v138_v12 = vld [vmem:[#allocation9 + $0x28] sm:$0xff]  ;;  %v137_v13 = vld [vmem:[#allocation9 + $0x20] sm:$0xff]  ;;  %v136_v14 = vld [vmem:[#allocation9 + $0x18] sm:$0xff] }
  0x1f   :  { %v135_v15 = vld [vmem:[#allocation9 + $0x10] sm:$0xff]  ;;  %v134_v16 = vld [vmem:[#allocation9 + $0x8] sm:$0xff]  ;;  %v133_v17 = vld [vmem:[#allocation9] sm:$0xff] }
  0x20   :  { %155 = vmatpush.msra.mxu1 %v146_v4  ;;  %v189_v18 = vld [vmem:[#allocation10 + $0x78] sm:$0xff]  ;;  %v188_v19 = vld [vmem:[#allocation10 + $0x70] sm:$0xff]  ;;  %v187_v20 = vld [vmem:[#allocation10 + $0x68] sm:$0xff]  ;;  %v217_v45 = vstv %s215_s9 }
  0x21   :  { %194 = vmatpush.msra.mxu2 %v189_v18  ;;  %v186_v21 = vld [vmem:[#allocation10 + $0x60] sm:$0xff]  ;;  %v185_v22 = vld [vmem:[#allocation10 + $0x58] sm:$0xff]  ;;  %v184_v23 = vld [vmem:[#allocation10 + $0x50] sm:$0xff]  ;;  %v219_v47 = vstv %s243_s10 }
  0x22   :  { %156 = vmatpush.msra.mxu1 %v145_v5  ;;  %v183_v24 = vld [vmem:[#allocation10 + $0x48] sm:$0xff]  ;;  %v182_v25 = vld [vmem:[#allocation10 + $0x40] sm:$0xff]  ;;  %v181_v26 = vld [vmem:[#allocation10 + $0x38] sm:$0xff] }
  0x23   :  { %195 = vmatpush.msra.mxu2 %v188_v19  ;;  %v180_v27 = vld [vmem:[#allocation10 + $0x30] sm:$0xff]  ;;  %v179_v28 = vld [vmem:[#allocation10 + $0x28] sm:$0xff]  ;;  %v178_v29 = vld [vmem:[#allocation10 + $0x20] sm:$0xff] }
  0x24   :  { %157 = vmatpush.msra.mxu1 %v144_v6  ;;  %v177_v30 = vld [vmem:[#allocation10 + $0x18] sm:$0xff]  ;;  %v252_v31 = vld [vmem:[%s482_s3] ss:$0 sm:$0xff]  ;;  %v175_v36 = vld [vmem:[#allocation10 + $0x8] sm:$0xff] }
  0x25   :  { %196 = vmatpush.msra.mxu2 %v187_v20  ;;  %v176_v35 = vld [vmem:[#allocation10 + $0x10] sm:$0xff]  ;;  %v174_v37 = vld [vmem:[#allocation10] sm:$0xff] }
  0x26   :  { %158 = vmatpush.msra.mxu1 %v143_v7  ;;  %v253_v38 = vld [vmem:[%s484_s5] ss:$0 sm:$0xff] }
  0x27   :  { %197 = vmatpush.msra.mxu2 %v186_v21  ;;  %v254_v42 = vld [vmem:[%s486_s7] ss:$0 sm:$0xff] }
  0x28   :  { %159 = vmatpush.msra.mxu1 %v142_v8 }
  0x29   :  { %198 = vmatpush.msra.mxu2 %v185_v22 }
  0x2a   :  { %160 = vmatpush.msra.mxu1 %v141_v9 }
  0x2b   :  { %199 = vmatpush.msra.mxu2 %v184_v23 }
  0x2c   :  { %161 = vmatpush.msra.mxu1 %v140_v10 }
  0x2d   :  { %200 = vmatpush.msra.mxu2 %v183_v24 }
  0x2e   :  { %162 = vmatpush.msra.mxu1 %v139_v11 }
  0x2f   :  { %201 = vmatpush.msra.mxu2 %v182_v25 }
  0x30   :  { %163 = vmatpush.msra.mxu1 %v138_v12 }
  0x31   :  { %202 = vmatpush.msra.mxu2 %v181_v26 }
  0x32   :  { %164 = vmatpush.msra.mxu1 %v137_v13 }
  0x33   :  { %203 = vmatpush.msra.mxu2 %v180_v27 }
  0x34   :  { %165 = vmatpush.msra.mxu1 %v136_v14 }
  0x35   :  { %204 = vmatpush.msra.mxu2 %v179_v28 }
  0x36   :  { %166 = vmatpush.msra.mxu1 %v135_v15 }
  0x37   :  { %205 = vmatpush.msra.mxu2 %v178_v29 }
  0x38   :  { %167 = vmatpush.msra.mxu1 %v134_v16 }
  0x39   :  { %206 = vmatpush.msra.mxu2 %v177_v30 }
  0x3a   :  { %168 = vmatpush.msra.mxu1 %v133_v17 }
  0x3b   :  { %207 = vmatpush.msra.mxu2 %v176_v35 }
  0x3d   :  { %208 = vmatpush.msra.mxu2 %v175_v36 }
  0x3f   :  { %209 = vmatpush.msra.mxu2 %v174_v37 }
  0x99   :  { %v129_v32 = vpop.f32.mrf.mxu0 }
  0x9a   :  { %v130_v33 = vadd.f32 %v252_v31, %v129_v32 }
  0x9c   :  { %v132_v34 = vmax.f32 %v130_v33, 0.0 }
  0x9e   :  { %169 = vmatmul.f32.vlgmr.msra.gmra.mxu1 %v132_v34 }
 0x11b   :  { %v170_v39 = vpop.f32.mrf.mxu1 }
 0x11c   :  { %v171_v40 = vadd.f32 %v253_v38, %v170_v39 }
 0x11e   :  { %v173_v41 = vmax.f32 %v171_v40, 0.0 }
 0x120   :  { %210 = vmatmul.f32.vlgmr.msra.gmra.mxu2 %v173_v41 }
 0x1a3   :  { %v211_v43 = vpop.f32.mrf.mxu2 }
 0x1a4   :  { %v212_v44 = vadd.f32 %v254_v42, %v211_v43 }
 0x1a6   :  { %255 = vtanh.f32 %v212_v44 }
 0x1ac   :  { %v256_v46 = vpop.eup %255 }
 0x1ad   :  { %v218_v48 = vmul.f32 %v256_v46, %v217_v45 }
 0x1af   :  { %v220_v49 = vadd.f32 %v219_v47, %v218_v48 }
 0x1b1   :  { %221 = vst [vmem:[#allocation12] sm:$0xff] %v220_v49 }
 0x1b2   :  { %232 = dma.vmem_to_hbm [thread:$0]  %s228_s12, 128, %s230_s14, [#allocation4]  }
 0x1b3   :  { %397 = dma.done.wait [#allocation4], 128  }
 0x1b4   :  { %398 = vsyncadd [#allocation4], 4294967168 }
 0x1b5   :  { %237 = vsyncpa [#allocation3], 1 }
 0x1b6   :  { %238 = vsyncpa [#allocation8], 1 }
 0x1b7   :  { %239 = vsyncpa [#allocation11], 1 }
 0x1b8   :  { %240 = vsyncpa [#allocation4], 1 }
 0x1b9   :  { %241 = vsyncpa [#allocation5], 1 }

</bundles_post_ra>
